<compile_context>
chip_gen: v6e
topology: v6e:2x2x1
jax: 0.10.0
libtpu: 0.0.40
codegen_flags: <defaults>
</compile_context>

<pallas_src>
import functools

import jax
import jax.numpy as jnp
from jax.experimental import pallas as pl
from jax.experimental.pallas import tpu as pltpu


def _sigmoid(z):
    # Numerically-stable logistic (no inf intermediates for |z| large).
    pos = 1.0 / (1.0 + jnp.exp(-z))
    ez = jnp.exp(z)
    neg = ez / (1.0 + ez)
    return jnp.where(z >= 0, pos, neg)


def _vmem_limit_bytes():
    cap = None
    try:
        info = pltpu.get_tpu_info()
        cap = getattr(info, "vmem_capacity_bytes", None)
    except Exception:
        cap = None
    if not cap:
        cap = 64 << 20          # conservative fallback = v7x physical VMEM
    return min((int(cap) * 3) // 4, 96 << 20)


# ------------------------------------------------------------------
# Fused path (whole activations resident in VMEM): pool + SE MLP + gate.
# Weights arrive pre-transposed (row orientation), biases as (1, C) rows.
# ------------------------------------------------------------------
def _fused_kernel(xl_ref, xg_ref, w1l_ref, w1g_ref, b1_ref,
                  wl_ref, bl_ref, wg_ref, bg_ref,
                  outl_ref, outg_ref, *, inv_hw):
    xl = xl_ref[...].astype(jnp.float32)          # (N, Cl, HW)
    xg = xg_ref[...].astype(jnp.float32)          # (N, Cg, HW)
    pooled_l = jnp.sum(xl, axis=-1) * inv_hw      # (N, Cl)
    pooled_g = jnp.sum(xg, axis=-1) * inv_hw      # (N, Cg)
    h = (jnp.dot(pooled_l, w1l_ref[...], preferred_element_type=jnp.float32)
         + jnp.dot(pooled_g, w1g_ref[...], preferred_element_type=jnp.float32)
         + b1_ref[...])
    h = jnp.maximum(h, 0.0)
    s_l = _sigmoid(jnp.dot(h, wl_ref[...], preferred_element_type=jnp.float32)
                   + bl_ref[...])                 # (N, Cl)
    s_g = _sigmoid(jnp.dot(h, wg_ref[...], preferred_element_type=jnp.float32)
                   + bg_ref[...])                 # (N, Cg)
    outl_ref[...] = (xl * s_l[:, :, None]).astype(outl_ref.dtype)
    outg_ref[...] = (xg * s_g[:, :, None]).astype(outg_ref.dtype)


# ------------------------------------------------------------------
# Streaming path, kernel 1: global average pool (tiled reduction over H*W,
# lane-dense accumulator) + tiny SE MLP in the epilogue of each batch row.
# Weights arrive in original (out, in) orientation, biases as (C, 1) columns,
# so the whole epilogue stays in column orientation (C on sublanes) and the
# gate can be written directly as (1, C, 1) without a transpose.
# ------------------------------------------------------------------
def _pool_se_kernel(xl_ref, xg_ref, w1l_ref, w1g_ref, b1_ref,
                    wl_ref, bl_ref, wg_ref, bg_ref,
                    scale_l_ref, scale_g_ref,
                    accl_ref, accg_ref, *, inv_hw, lane_chunks):
    j = pl.program_id(1)

    @pl.when(j == 0)
    def _init():
        accl_ref[...] = jnp.zeros_like(accl_ref)
        accg_ref[...] = jnp.zeros_like(accg_ref)

    # Lane-dense partial sums: pure VPU adds over aligned 128-lane chunks
    # (no per-step XLU reduce / relayout) -> hidden under the stream DMA.
    psum_l = xl_ref[:, :, 0:128].astype(jnp.float32)
    psum_g = xg_ref[:, :, 0:128].astype(jnp.float32)
    for m in range(1, lane_chunks):
        lo, hi = m * 128, (m + 1) * 128
        psum_l = psum_l + xl_ref[:, :, lo:hi].astype(jnp.float32)
        psum_g = psum_g + xg_ref[:, :, lo:hi].astype(jnp.float32)
    accl_ref[...] += psum_l
    accg_ref[...] += psum_g

    @pl.when(j == pl.num_programs(1) - 1)
    def _epilogue():
        pooled_l = jnp.sum(accl_ref[0], axis=-1, keepdims=True) * inv_hw   # (Cl, 1)
        pooled_g = jnp.sum(accg_ref[0], axis=-1, keepdims=True) * inv_hw   # (Cg, 1)
        h = (jnp.dot(w1l_ref[...], pooled_l, preferred_element_type=jnp.float32)
             + jnp.dot(w1g_ref[...], pooled_g, preferred_element_type=jnp.float32)
             + b1_ref[...])                                                 # (Cr, 1)
        h = jnp.maximum(h, 0.0)
        s_l = _sigmoid(jnp.dot(wl_ref[...], h, preferred_element_type=jnp.float32)
                       + bl_ref[...])                                       # (Cl, 1)
        s_g = _sigmoid(jnp.dot(wg_ref[...], h, preferred_element_type=jnp.float32)
                       + bg_ref[...])                                       # (Cg, 1)
        scale_l_ref[...] = s_l[None]                                        # (1, Cl, 1)
        scale_g_ref[...] = s_g[None]


# ------------------------------------------------------------------
# Streaming path, kernel 2: elementwise gating over lane-dense H*W tiles.
# Gates are (1, C, 1): C already on sublanes -> lane-splat, no transpose.
# ------------------------------------------------------------------
def _gate_kernel(xl_ref, xg_ref, sl_ref, sg_ref, outl_ref, outg_ref):
    outl_ref[...] = (xl_ref[...].astype(jnp.float32) * sl_ref[...]).astype(outl_ref.dtype)
    outg_ref[...] = (xg_ref[...].astype(jnp.float32) * sg_ref[...]).astype(outg_ref.dtype)


# ------------------------------------------------------------------
# Two-branch driver.
# ------------------------------------------------------------------
def _ffcse_two_branch(xl4, xg4, w1l, w1g, b1, wl, bl, wg, bg, *,
                      force_streaming=False, donate_inputs=False):
    N, Cl, H, W = xl4.shape
    _, Cg, _, _ = xg4.shape
    HW = H * W
    dtype = xl4.dtype
    Cr = w1l.shape[0]
    assert Cr >= 1, "channels must be >= 16 so channels // 16 >= 1"

    vmem_limit = _vmem_limit_bytes()
    itemsize = dtype.itemsize
    inv_hw = 1.0 / float(HW)
    aliases = {0: 0, 1: 1} if donate_inputs else {}

    xl = xl4.reshape(N, Cl, HW)
    xg = xg4.reshape(N, Cg, HW)

    # ---------------- fused single pass (1R + 1W of HBM) ----------------
    resident_bytes = 2 * (xl.size + xg.size) * itemsize     # inputs + outputs
    if (not force_streaming) and resident_bytes <= vmem_limit // 2:
        out_l, out_g = pl.pallas_call(
            functools.partial(_fused_kernel, inv_hw=inv_hw),
            out_shape=(jax.ShapeDtypeStruct((N, Cl, HW), dtype),
                       jax.ShapeDtypeStruct((N, Cg, HW), dtype)),
            input_output_aliases=aliases,
            compiler_params=pltpu.CompilerParams(vmem_limit_bytes=vmem_limit),
        )(xl, xg, w1l.T, w1g.T, b1.reshape(1, Cr),
          wl.T, bl.reshape(1, Cl), wg.T, bg.reshape(1, Cg))
        return out_l.reshape(N, Cl, H, W), out_g.reshape(N, Cg, H, W)

    # ---------------- streaming two-pass path ----------------
    # Zero-pad H*W to a 128 multiple (sum unchanged; inv_hw = 1/true_HW).
    q = (HW + 127) // 128
    hw_pad = q * 128
    if hw_pad != HW:
        pad = hw_pad - HW
        xl = jnp.pad(xl, ((0, 0), (0, 0), (0, pad)))
        xg = jnp.pad(xg, ((0, 0), (0, 0), (0, pad)))

    # Tile budget: the gate pass double-buffers 2 inputs + 2 outputs of
    # (1, C, block_hw); keep that within a fraction of scoped VMEM so it fits
    # v7x (64 MiB physical) and v5e (small default scoped limit) alike.
    tile_budget = vmem_limit // 3
    per_lane_bytes = (Cl + Cg) * itemsize * 4                # 2 in + 2 out streams
    chunk_cap = max(1, tile_budget // (2 * per_lane_bytes * 128))
    chunk_cap = min(chunk_cap, 32)                           # bound unroll / DMA grain
    lane_chunks = 1
    for c in range(1, q + 1):                                # largest divisor <= cap
        if q % c == 0 and c <= chunk_cap:
            lane_chunks = c
    block_hw = lane_chunks * 128
    n_tiles = q // lane_chunks
    grid = (N, n_tiles)

    def _const(shape):
        return pl.BlockSpec(shape, lambda n, j: (0,) * len(shape))

    # Pass 1: pooled mean + SE MLP -> per-(n, channel) gates, (N, C, 1) f32.
    # TODO(synk): when N == 1, a channel-block parallel axis would let v7x use
    #             both TensorCores for the pooling pass as well.
    scale_l, scale_g = pl.pallas_call(
        functools.partial(_pool_se_kernel, inv_hw=inv_hw, lane_chunks=lane_chunks),
        out_shape=(jax.ShapeDtypeStruct((N, Cl, 1), jnp.float32),
                   jax.ShapeDtypeStruct((N, Cg, 1), jnp.float32)),
        grid=grid,
        in_specs=[
            pl.BlockSpec((1, Cl, block_hw), lambda n, j: (n, 0, j)),
            pl.BlockSpec((1, Cg, block_hw), lambda n, j: (n, 0, j)),
            _const((Cr, Cl)), _const((Cr, Cg)), _const((Cr, 1)),
            _const((Cl, Cr)), _const((Cl, 1)),
            _const((Cg, Cr)), _const((Cg, 1)),
        ],
        out_specs=(pl.BlockSpec((1, Cl, 1), lambda n, j: (n, 0, 0)),
                   pl.BlockSpec((1, Cg, 1), lambda n, j: (n, 0, 0))),
        scratch_shapes=[pltpu.VMEM((1, Cl, 128), jnp.float32),
                        pltpu.VMEM((1, Cg, 128), jnp.float32)],
        compiler_params=pltpu.CompilerParams(
            dimension_semantics=("parallel", "arbitrary"),
            vmem_limit_bytes=vmem_limit),
    )(xl, xg, w1l, w1g, b1.reshape(Cr, 1),
      wl, bl.reshape(Cl, 1), wg, bg.reshape(Cg, 1))

    # Pass 2: gate the local / global branches (fully parallel grid).
    out_l, out_g = pl.pallas_call(
        _gate_kernel,
        out_shape=(jax.ShapeDtypeStruct((N, Cl, hw_pad), dtype),
                   jax.ShapeDtypeStruct((N, Cg, hw_pad), dtype)),
        grid=grid,
        in_specs=[
            pl.BlockSpec((1, Cl, block_hw), lambda n, j: (n, 0, j)),
            pl.BlockSpec((1, Cg, block_hw), lambda n, j: (n, 0, j)),
            pl.BlockSpec((1, Cl, 1), lambda n, j: (n, 0, 0)),
            pl.BlockSpec((1, Cg, 1), lambda n, j: (n, 0, 0)),
        ],
        out_specs=(pl.BlockSpec((1, Cl, block_hw), lambda n, j: (n, 0, j)),
                   pl.BlockSpec((1, Cg, block_hw), lambda n, j: (n, 0, j))),
        input_output_aliases=aliases,
        compiler_params=pltpu.CompilerParams(
            dimension_semantics=("parallel", "parallel"),
            vmem_limit_bytes=vmem_limit),
    )(xl, xg, scale_l, scale_g)

    if hw_pad != HW:
        out_l = out_l[:, :, :HW]
        out_g = out_g[:, :, :HW]
    return out_l.reshape(N, Cl, H, W), out_g.reshape(N, Cg, H, W)


# ------------------------------------------------------------------
# Public wrapper: FFCSE_block.forward (handles degenerate ratio_g in {0, 1}).
# ------------------------------------------------------------------
def ffcse_forward(id_l, id_g, params, *, force_streaming=False, donate_inputs=False):
    has_l = not (id_l is None or isinstance(id_l, int))
    has_g = not (id_g is None or isinstance(id_g, int))
    if not (has_l or has_g):
        raise ValueError("at least one of id_l / id_g must be an array")

    w1 = params['w1']
    b1 = params['b1']
    Cr = w1.shape[0]

    if has_l and has_g:
        Cl = id_l.shape[1]
        return _ffcse_two_branch(
            id_l, id_g, w1[:, :Cl], w1[:, Cl:], b1,
            params['wl'], params['bl'], params['wg'], params['bg'],
            force_streaming=force_streaming, donate_inputs=donate_inputs)

    # Degenerate case (module passes the missing branch as int 0): reuse the
    # two-branch kernels with a 1-channel zero dummy branch and zero weights.
    if has_l:
        x = id_l
        N, _, H, W = x.shape
        dummy = jnp.zeros((N, 1, H, W), x.dtype)
        out_l, _ = _ffcse_two_branch(
            x, dummy, w1, jnp.zeros((Cr, 1), w1.dtype), b1,
            params['wl'], params['bl'],
            jnp.zeros((1, Cr), w1.dtype), jnp.zeros((1,), w1.dtype),
            force_streaming=force_streaming, donate_inputs=False)
        return out_l, 0
    else:
        x = id_g
        N, _, H, W = x.shape
        dummy = jnp.zeros((N, 1, H, W), x.dtype)
        _, out_g = _ffcse_two_branch(
            dummy, x, jnp.zeros((Cr, 1), w1.dtype), w1, b1,
            jnp.zeros((1, Cr), w1.dtype), jnp.zeros((1,), w1.dtype),
            params['wg'], params['bg'],
            force_streaming=force_streaming, donate_inputs=False)
        return 0, out_g


# ------------------------------------------------------------------
# Deterministic parameter init (shapes follow the module's __init__):
#   conv1    : (channels//16, channels) + bias
#   conv_a2l : (in_cl, channels//16)    + bias   (only if in_cl > 0)
#   conv_a2g : (in_cg, channels//16)    + bias   (only if in_cg > 0)
# ------------------------------------------------------------------
def init_params(key, channels, ratio_g, r=16):
    in_cg = int(channels * ratio_g)
    in_cl = channels - in_cg
    cr = channels // r
    ks = jax.random.split(key, 6)

    def w(k, o, i):
        return jax.random.normal(k, (o, i), jnp.float32) / (float(i) ** 0.5)

    def b(k, o):
        return jax.random.normal(k, (o,), jnp.float32) * 0.01

    p = dict(w1=w(ks[0], cr, channels), b1=b(ks[1], cr))
    if in_cl > 0:
        p['wl'] = w(ks[2], in_cl, cr)
        p['bl'] = b(ks[3], in_cl)
    if in_cg > 0:
        p['wg'] = w(ks[4], in_cg, cr)
        p['bg'] = b(ks[5], in_cg)
    return p


if __name__ == "__main__":
    key = jax.random.PRNGKey(0)
    k_l, k_g, k_p, k_l2, k_p2 = jax.random.split(key, 5)

    def reference(id_l, id_g, params):
        has_g = not (id_g is None or isinstance(id_g, int))
        x = jnp.concatenate([id_l, id_g], axis=1) if has_g else id_l
        pooled = jnp.mean(x, axis=(2, 3))
        h = jnp.maximum(pooled @ params['w1'].T + params['b1'], 0.0)
        sl = jax.nn.sigmoid(h @ params['wl'].T + params['bl'])
        rl = id_l * sl[:, :, None, None]
        if has_g:
            sg = jax.nn.sigmoid(h @ params['wg'].T + params['bg'])
            rg = id_g * sg[:, :, None, None]
        else:
            rg = 0
        return rl, rg

    # Case 1: two-branch, HW multiple of 128 -> fused resident single pass.
    N, channels, H, W = 2, 32, 16, 16
    ratio_g = 0.5
    in_cg = int(channels * ratio_g)
    in_cl = channels - in_cg
    id_l = jax.random.normal(k_l, (N, in_cl, H, W), jnp.float32)
    id_g = jax.random.normal(k_g, (N, in_cg, H, W), jnp.float32)
    params = init_params(k_p, channels, ratio_g)

    out_l, out_g = ffcse_forward(id_l, id_g, params)
    out_l, out_g = jax.block_until_ready((out_l, out_g))
    ref_l, ref_g = reference(id_l, id_g, params)
    assert out_l.shape == ref_l.shape and out_g.shape == ref_g.shape
    assert bool(jnp.all(jnp.isfinite(out_l))) and bool(jnp.all(jnp.isfinite(out_g)))
    assert jnp.allclose(out_l, ref_l, rtol=1e-4, atol=1e-4)
    assert jnp.allclose(out_g, ref_g, rtol=1e-4, atol=1e-4)

    # Case 2: streaming two-pass path, HW not a multiple of 128 (14x14 -> pad).
    H2 = W2 = 14
    id_l2 = jax.random.normal(k_l2, (N, in_cl, H2, W2), jnp.float32)
    id_g2 = jax.random.normal(k_g, (N, in_cg, H2, W2), jnp.float32)
    out_l2, out_g2 = ffcse_forward(id_l2, id_g2, params, force_streaming=True)
    out_l2, out_g2 = jax.block_until_ready((out_l2, out_g2))
    ref_l2, ref_g2 = reference(id_l2, id_g2, params)
    assert jnp.allclose(out_l2, ref_l2, rtol=1e-4, atol=1e-4)
    assert jnp.allclose(out_g2, ref_g2, rtol=1e-4, atol=1e-4)

    # Case 3: degenerate ratio_g = 0 (id_g is the int 0, conv_a2g is None).
    params_l = init_params(k_p2, channels, 0.0)
    id_l3 = jax.random.normal(k_l, (N, channels, H, W), jnp.float32)
    out_l3, out_g3 = ffcse_forward(id_l3, 0, params_l)
    out_l3 = jax.block_until_ready(out_l3)
    ref_l3, _ = reference(id_l3, 0, params_l)
    assert out_g3 == 0
    assert jnp.allclose(out_l3, ref_l3, rtol=1e-4, atol=1e-4)

    print("KERNEL_OK")
</pallas_src>

<mosaic_0001>
module attributes {stable_mosaic.version = 11 : i64} {
  func.func @_fused_kernel(%arg0: memref<2x16x256xf32, #tpu.memory_space<vmem>>, %arg1: memref<2x16x256xf32, #tpu.memory_space<vmem>>, %arg2: memref<16x2xf32, #tpu.memory_space<vmem>>, %arg3: memref<16x2xf32, #tpu.memory_space<vmem>>, %arg4: memref<1x2xf32, #tpu.memory_space<vmem>>, %arg5: memref<2x16xf32, #tpu.memory_space<vmem>>, %arg6: memref<1x16xf32, #tpu.memory_space<vmem>>, %arg7: memref<2x16xf32, #tpu.memory_space<vmem>>, %arg8: memref<1x16xf32, #tpu.memory_space<vmem>>, %arg9: memref<2x16x256xf32, #tpu.memory_space<vmem>>, %arg10: memref<2x16x256xf32, #tpu.memory_space<vmem>>) attributes {dimension_semantics = [], scalar_prefetch = 0 : i64, scratch_operands = 0 : i64, tpu.core_type = #tpu.core_type<tc>} {
    %c0 = arith.constant 0 : index
    %c0_0 = arith.constant 0 : index
    %c0_1 = arith.constant 0 : index
    %0 = vector.load %arg0[%c0, %c0_0, %c0_1] : memref<2x16x256xf32, #tpu.memory_space<vmem>>, vector<2x16x256xf32>
    %c0_2 = arith.constant 0 : index
    %c0_3 = arith.constant 0 : index
    %c0_4 = arith.constant 0 : index
    %1 = vector.load %arg1[%c0_2, %c0_3, %c0_4] : memref<2x16x256xf32, #tpu.memory_space<vmem>>, vector<2x16x256xf32>
    %cst = arith.constant dense<0.000000e+00> : vector<2x16xf32>
    %2 = vector.multi_reduction <add>, %0, %cst [2] : vector<2x16x256xf32> to vector<2x16xf32>
    %cst_5 = arith.constant 3.906250e-03 : f32
    %3 = vector.broadcast %cst_5 : f32 to vector<2x16xf32>
    %4 = arith.mulf %2, %3 : vector<2x16xf32>
    %cst_6 = arith.constant dense<0.000000e+00> : vector<2x16xf32>
    %5 = vector.multi_reduction <add>, %1, %cst_6 [2] : vector<2x16x256xf32> to vector<2x16xf32>
    %cst_7 = arith.constant 3.906250e-03 : f32
    %6 = vector.broadcast %cst_7 : f32 to vector<2x16xf32>
    %7 = arith.mulf %5, %6 : vector<2x16xf32>
    %c0_8 = arith.constant 0 : index
    %c0_9 = arith.constant 0 : index
    %8 = vector.load %arg2[%c0_8, %c0_9] : memref<16x2xf32, #tpu.memory_space<vmem>>, vector<16x2xf32>
    %cst_10 = arith.constant dense<0.000000e+00> : vector<2x2xf32>
    %9 = tpu.matmul %4, %8, %cst_10 {dimension_numbers = #tpu.dot_dimension_numbers<[1], [0], [0], [1], [0, 0, 1, 1], [], []>} : vector<2x16xf32>, vector<16x2xf32>, vector<2x2xf32> -> vector<2x2xf32>
    %c0_11 = arith.constant 0 : index
    %c0_12 = arith.constant 0 : index
    %10 = vector.load %arg3[%c0_11, %c0_12] : memref<16x2xf32, #tpu.memory_space<vmem>>, vector<16x2xf32>
    %cst_13 = arith.constant dense<0.000000e+00> : vector<2x2xf32>
    %11 = tpu.matmul %7, %10, %cst_13 {dimension_numbers = #tpu.dot_dimension_numbers<[1], [0], [0], [1], [0, 0, 1, 1], [], []>} : vector<2x16xf32>, vector<16x2xf32>, vector<2x2xf32> -> vector<2x2xf32>
    %12 = arith.addf %9, %11 : vector<2x2xf32>
    %c0_14 = arith.constant 0 : index
    %c0_15 = arith.constant 0 : index
    %13 = vector.load %arg4[%c0_14, %c0_15] : memref<1x2xf32, #tpu.memory_space<vmem>>, vector<1x2xf32>
    %14 = vector.broadcast %13 : vector<1x2xf32> to vector<2x2xf32>
    %15 = arith.addf %12, %14 : vector<2x2xf32>
    %cst_16 = arith.constant 0.000000e+00 : f32
    %16 = vector.broadcast %cst_16 : f32 to vector<2x2xf32>
    %17 = arith.maximumf %15, %16 : vector<2x2xf32>
    %c0_17 = arith.constant 0 : index
    %c0_18 = arith.constant 0 : index
    %18 = vector.load %arg5[%c0_17, %c0_18] : memref<2x16xf32, #tpu.memory_space<vmem>>, vector<2x16xf32>
    %cst_19 = arith.constant dense<0.000000e+00> : vector<2x16xf32>
    %19 = tpu.matmul %17, %18, %cst_19 {dimension_numbers = #tpu.dot_dimension_numbers<[1], [0], [0], [1], [0, 0, 1, 1], [], []>} : vector<2x2xf32>, vector<2x16xf32>, vector<2x16xf32> -> vector<2x16xf32>
    %c0_20 = arith.constant 0 : index
    %c0_21 = arith.constant 0 : index
    %20 = vector.load %arg6[%c0_20, %c0_21] : memref<1x16xf32, #tpu.memory_space<vmem>>, vector<1x16xf32>
    %21 = vector.broadcast %20 : vector<1x16xf32> to vector<2x16xf32>
    %22 = arith.addf %19, %21 : vector<2x16xf32>
    %cst_22 = arith.constant 0.000000e+00 : f32
    %23 = vector.broadcast %cst_22 : f32 to vector<2x16xf32>
    %24 = arith.subf %23, %22 : vector<2x16xf32>
    %25 = math.exp %24 : vector<2x16xf32>
    %cst_23 = arith.constant 1.000000e+00 : f32
    %26 = vector.broadcast %cst_23 : f32 to vector<2x16xf32>
    %27 = arith.addf %26, %25 : vector<2x16xf32>
    %cst_24 = arith.constant 1.000000e+00 : f32
    %28 = vector.broadcast %cst_24 : f32 to vector<2x16xf32>
    %29 = arith.divf %28, %27 : vector<2x16xf32>
    %30 = math.exp %22 : vector<2x16xf32>
    %cst_25 = arith.constant 1.000000e+00 : f32
    %31 = vector.broadcast %cst_25 : f32 to vector<2x16xf32>
    %32 = arith.addf %31, %30 : vector<2x16xf32>
    %33 = arith.divf %30, %32 : vector<2x16xf32>
    %cst_26 = arith.constant 0.000000e+00 : f32
    %34 = vector.broadcast %cst_26 : f32 to vector<2x16xf32>
    %35 = arith.cmpf oge, %22, %34 : vector<2x16xf32>
    %36 = arith.select %35, %29, %33 : vector<2x16xi1>, vector<2x16xf32>
    %c0_27 = arith.constant 0 : index
    %c0_28 = arith.constant 0 : index
    %37 = vector.load %arg7[%c0_27, %c0_28] : memref<2x16xf32, #tpu.memory_space<vmem>>, vector<2x16xf32>
    %cst_29 = arith.constant dense<0.000000e+00> : vector<2x16xf32>
    %38 = tpu.matmul %17, %37, %cst_29 {dimension_numbers = #tpu.dot_dimension_numbers<[1], [0], [0], [1], [0, 0, 1, 1], [], []>} : vector<2x2xf32>, vector<2x16xf32>, vector<2x16xf32> -> vector<2x16xf32>
    %c0_30 = arith.constant 0 : index
    %c0_31 = arith.constant 0 : index
    %39 = vector.load %arg8[%c0_30, %c0_31] : memref<1x16xf32, #tpu.memory_space<vmem>>, vector<1x16xf32>
    %40 = vector.broadcast %39 : vector<1x16xf32> to vector<2x16xf32>
    %41 = arith.addf %38, %40 : vector<2x16xf32>
    %cst_32 = arith.constant 0.000000e+00 : f32
    %42 = vector.broadcast %cst_32 : f32 to vector<2x16xf32>
    %43 = arith.subf %42, %41 : vector<2x16xf32>
    %44 = math.exp %43 : vector<2x16xf32>
    %cst_33 = arith.constant 1.000000e+00 : f32
    %45 = vector.broadcast %cst_33 : f32 to vector<2x16xf32>
    %46 = arith.addf %45, %44 : vector<2x16xf32>
    %cst_34 = arith.constant 1.000000e+00 : f32
    %47 = vector.broadcast %cst_34 : f32 to vector<2x16xf32>
    %48 = arith.divf %47, %46 : vector<2x16xf32>
    %49 = math.exp %41 : vector<2x16xf32>
    %cst_35 = arith.constant 1.000000e+00 : f32
    %50 = vector.broadcast %cst_35 : f32 to vector<2x16xf32>
    %51 = arith.addf %50, %49 : vector<2x16xf32>
    %52 = arith.divf %49, %51 : vector<2x16xf32>
    %cst_36 = arith.constant 0.000000e+00 : f32
    %53 = vector.broadcast %cst_36 : f32 to vector<2x16xf32>
    %54 = arith.cmpf oge, %41, %53 : vector<2x16xf32>
    %55 = arith.select %54, %48, %52 : vector<2x16xi1>, vector<2x16xf32>
    %56 = vector.shape_cast %36 : vector<2x16xf32> to vector<2x16x1xf32>
    %57 = vector.broadcast %56 : vector<2x16x1xf32> to vector<2x16x256xf32>
    %58 = arith.mulf %0, %57 : vector<2x16x256xf32>
    %c0_37 = arith.constant 0 : index
    %c0_38 = arith.constant 0 : index
    %c0_39 = arith.constant 0 : index
    %59 = vector.load %arg9[%c0_37, %c0_38, %c0_39] : memref<2x16x256xf32, #tpu.memory_space<vmem>>, vector<2x16x256xf32>
    tpu.vector_store %arg9[%c0_37, %c0_38, %c0_39], %58 {strides = array<i32>} : memref<2x16x256xf32, #tpu.memory_space<vmem>>, vector<2x16x256xf32>,
    %60 = vector.shape_cast %55 : vector<2x16xf32> to vector<2x16x1xf32>
    %61 = vector.broadcast %60 : vector<2x16x1xf32> to vector<2x16x256xf32>
    %62 = arith.mulf %1, %61 : vector<2x16x256xf32>
    %c0_40 = arith.constant 0 : index
    %c0_41 = arith.constant 0 : index
    %c0_42 = arith.constant 0 : index
    %63 = vector.load %arg10[%c0_40, %c0_41, %c0_42] : memref<2x16x256xf32, #tpu.memory_space<vmem>>, vector<2x16x256xf32>
    tpu.vector_store %arg10[%c0_40, %c0_41, %c0_42], %62 {strides = array<i32>} : memref<2x16x256xf32, #tpu.memory_space<vmem>>, vector<2x16x256xf32>,
    return
  }
}

</mosaic_0001>

<bundles_post_ra>
// kernel: tpu_custom_call.1
= control target key start
LH: loop header
LB: loop body
LE: loop exit
PB: predicated region body
PF: predicated region fallthrough
CT: control target
= control target key end

     0   :  { %16 = vsyncpa [#allocation3], 0  ;;  %s975_s0 = inlined_call_operand.hbm [shape: f32[2,16,256], index: 0, kind: input, shape index: {}]   ;;  %s976_s1 = inlined_call_operand.hbm [shape: f32[2,16,256], index: 1, kind: input, shape index: {}]   ;;  %s977_s2 = inlined_call_operand.vmem [shape: f32[16,2], index: 2, kind: input, shape index: {}]   ;;  %s978_s3 = inlined_call_operand.vmem [shape: f32[16,2], index: 3, kind: input, shape index: {}]   ;;  %s979_s4 = inlined_call_operand.vmem [shape: f32[1,2], index: 4, kind: input, shape index: {}]   ;;  %s980_s5 = inlined_call_operand.vmem [shape: f32[2,16], index: 5, kind: input, shape index: {}]   ;;  %s981_s6 = inlined_call_operand.vmem [shape: f32[1,16], index: 6, kind: input, shape index: {}]   ;;  %s982_s7 = inlined_call_operand.vmem [shape: f32[2,16], index: 7, kind: input, shape index: {}]   ;;  %s983_s8 = inlined_call_operand.vmem [shape: f32[1,16], index: 8, kind: input, shape index: {}]   ;;  %s984_s9 = inlined_call_operand.hbm [shape: f32[2,16,256], index: 9, kind: output, shape index: {0}]   ;;  %s985_s10 = inlined_call_operand.hbm [shape: f32[2,16,256], index: 10, kind: output, shape index: {1}]  }
   0x1   :  { %17 = vsyncpa [#allocation6], 0 }
   0x2   :  { %18 = vsyncpa [#allocation4], 0 }
   0x3   :  { %19 = vsyncpa [#allocation9], 0  ;;  %s779_s13 = smov [#allocation2]  }
   0x4   :  { %s25_s14 = sshll.u32 %s779_s13, 4  ;;  %s26_s14 = int_to_ptr.vmem [resolvable:$true] %s25_s14 }
   0x5   :  { %s699_s15 = scalar_lea.vmem %s26_s14, 1024  ;;  %p704_p1 = scmp.lt.s32.totalorder %s26_s14, %s26_s14 }
   0x6   :  { %p700_p0 = scmp.ne.s32.totalorder %s26_s14, %s699_s15  ;;  %p705_p2 = scmp.lt.s32.totalorder %s699_s15, %s699_s15 }
   0x8   :  { %p706_p3 = por %p705_p2, %p704_p1 }
   0xa   :  { %p707_p4 = pnand %p706_p3, %p700_p0 }
   0xc   :  { %710 = shalt.err (!%p707_p4)
}
   0xd   :  { %s780_s16 = smov 256   ;;  %s781_s17 = smov 16  }
   0xe   :  { %31 = dma.hbm_to_vmem [thread:$0]  %s975_s0, 1024, %s26_s14, [#allocation3], %s780_s16, %s780_s16, %s781_s17  }
   0xf   :  { %s782_s20 = smov [#allocation5]  }
  0x10   :  { %s37_s21 = sshll.u32 %s782_s20, 4  ;;  %s38_s21 = int_to_ptr.vmem [resolvable:$true] %s37_s21 }
  0x11   :  { %s719_s22 = scalar_lea.vmem %s38_s21, 1024  ;;  %p724_p6 = scmp.lt.s32.totalorder %s38_s21, %s38_s21 }
  0x12   :  { %p720_p5 = scmp.ne.s32.totalorder %s38_s21, %s719_s22  ;;  %p725_p7 = scmp.lt.s32.totalorder %s719_s22, %s719_s22 }
  0x14   :  { %p726_p8 = por %p725_p7, %p724_p6 }
  0x16   :  { %p727_p9 = pnand %p726_p8, %p720_p5 }
  0x18   :  { %730 = shalt.err (!%p727_p9)
}
  0x19   :  { %43 = dma.hbm_to_vmem [thread:$0]  %s976_s1, 1024, %s38_s21, [#allocation6], %s780_s16, %s780_s16, %s781_s17  }
  0x1a   :  { %771 = dma.done.wait [#allocation3], 1024  }
  0x1b   :  { %772 = vsyncadd [#allocation3], 4294966272 }
  0x1c   :  { %773 = dma.done.wait [#allocation6], 1024  }
  0x1d   :  { %774 = vsyncadd [#allocation6], 4294966272  ;;  %v854_v0 = vld [vmem:[#allocation2 + $0x20] sm:$0xff]  ;;  %v856_v1 = vld [vmem:[#allocation2 + $0x28] sm:$0xff]  ;;  %v783_v24 = vmov 0.0   ;;  %vm784_vm0 = vmmov 0   ;;  %v120_v29 = vlaneseq }
  0x1e   :  { %v858_v2 = vld [vmem:[#allocation2] sm:$0xff]  ;;  %v86_v3 = vadd.f32 %v856_v1, %v854_v0  ;;  %v862_v4 = vld [vmem:[#allocation2 + $0x8] sm:$0xff]  ;;  %v864_v5 = vld [vmem:[#allocation2 + $0x30] sm:$0xff]  ;;  %650 = vmatprep.subr.mxu1 %v783_v24  ;;  %643 = vmatprep.subr.mxu0 %v783_v24  ;;  %vm131_vm1 = vcmask 130112   ;;  %vm142_vm2 = vcmask 1041409   ;;  %vm144_vm3 = vcmask 130048  }
  0x1f   :  { %v866_v6 = vld [vmem:[#allocation2 + $0x38] sm:$0xff]  ;;  %v80_v7 = vadd.f32 %v862_v4, %v858_v2  ;;  %v870_v8 = vld [vmem:[#allocation2 + $0x10] sm:$0xff]  ;;  %v882_v14 = vld [vmem:[#allocation5] sm:$0xff]  ;;  %654 = vmatprep.mubr.msk.f32.mxu1 %vm784_vm0, %v783_v24  ;;  %647 = vmatprep.mubr.msk.f32.mxu0 %vm784_vm0, %v783_v24  ;;  %v121_v30 = vand.u32 127, %v120_v29  ;;  %v916_v31 = vshrl.u32 %v120_v29, 7  ;;  %vm333_vm4 = vcmask 1041408  }
  0x20   :  { %v872_v9 = vld [vmem:[#allocation2 + $0x18] sm:$0xff]  ;;  %87 = vadd.xlane.f32.xlu1 %v86_v3  ;;  %v89_v10 = vadd.f32 %v866_v6, %v864_v5  ;;  %v878_v12 = vld [vmem:[#allocation5 + $0x10] sm:$0xff]  ;;  %v884_v15 = vld [vmem:[#allocation5 + $0x8] sm:$0xff]  ;;  %vm329_vm5 = vcmask 15360  }
  0x21   :  { %81 = vadd.xlane.f32.xlu0 %v80_v7  ;;  %v83_v11 = vadd.f32 %v872_v9, %v870_v8  ;;  %v880_v13 = vld [vmem:[#allocation5 + $0x18] sm:$0xff]  ;;  %v96_v17 = vadd.f32 %v884_v15, %v882_v14  ;;  %v890_v18 = vld [vmem:[#allocation5 + $0x30] sm:$0xff]  ;;  %v894_v20 = vld [vmem:[#allocation5 + $0x20] sm:$0xff]  ;;  %v126_v32 = vadd.s32 4294967288, %v121_v30  ;;  %v124_v35 = vsub.s32 %v121_v30, %v916_v31 }
  0x22   :  { %v99_v16 = vadd.f32 %v880_v13, %v878_v12  ;;  %v892_v19 = vld [vmem:[#allocation5 + $0x38] sm:$0xff]  ;;  %v896_v21 = vld [vmem:[#allocation5 + $0x28] sm:$0xff]  ;;  %v112_v26 = vld [vmem:[%s977_s2] sm:$0xff] }
  0x23   :  { %v105_v22 = vadd.f32 %v892_v19, %v890_v18  ;;  %v102_v23 = vadd.f32 %v896_v21, %v894_v20  ;;  %v113_v25 = vld [vmem:[%s977_s2 + $0x8] sm:$0xff]  ;;  %v114_v28 = vld [vmem:[%s978_s3] sm:$0xff]  ;;  %v129_v37 = vsub.s32 %v126_v32, %v916_v31 }
  0x24   :  { %90 = vadd.xlane.f32.xlu1 %v89_v10  ;;  %651 = vmatpush3.msra.mxu1 %v113_v25  ;;  %v115_v27 = vld [vmem:[%s978_s3 + $0x8] sm:$0xff]  ;;  %v321_v7 = vld [vmem:[%s980_s5] sm:$0x3] }
  0x25   :  { %84 = vadd.xlane.f32.xlu0 %v83_v11  ;;  %652 = vmatprep.subr.mxu1 %v783_v24  ;;  %v420_v10 = vld [vmem:[%s982_s7] sm:$0x3] }
  0x26   :  { %653 = vmatpush3.msra.mxu1 %v112_v26  ;;  %644 = vmatpush3.msra.mxu0 %v115_v27  ;;  %v627_v27 = vld [vmem:[%s981_s6] ss:$0 sm:$0xff] }
  0x27   :  { %662 = vmatprep.subr.mxu1 %v783_v24  ;;  %645 = vmatprep.subr.mxu0 %v783_v24 }
  0x28   :  { %100 = vadd.xlane.f32.xlu1 %v99_v16  ;;  %646 = vmatpush3.msra.mxu0 %v114_v28  ;;  %v630_v28 = vld [vmem:[%s983_s8] ss:$0 sm:$0xff] }
  0x29   :  { %97 = vadd.xlane.f32.xlu0 %v96_v17  ;;  %657 = vmatprep.subr.mxu0 %v783_v24 }
  0x2c   :  { %106 = vadd.xlane.f32.xlu1 %v105_v22  ;;  %v626_v22 = vld [vmem:[%s979_s4] ss:$0 sm:$0xff]  ;;  %s785_s4 = smov [#allocation7]  }
  0x2d   :  { %103 = vadd.xlane.f32.xlu0 %v102_v23  ;;  %s595_s6 = sshll.u32 %s785_s4, 4  ;;  %s596_s6 = int_to_ptr.vmem [resolvable:$true] %s595_s6 }
  0x2e   :  { %s731_s8 = scalar_lea.vmem %s596_s6, 1024  ;;  %p736_p11 = scmp.lt.s32.totalorder %s596_s6, %s596_s6 }
  0x2f   :  { %p732_p10 = scmp.ne.s32.totalorder %s596_s6, %s731_s8  ;;  %p737_p12 = scmp.lt.s32.totalorder %s731_s8, %s731_s8 }
  0x31   :  { %p738_p13 = por %p737_p12, %p736_p11 }
  0x33   :  { %p739_p0 = pnand %p738_p13, %p732_p10 }
  0xa9   :  { %v88_v33 = vpop.xlane.xlu1 %87 }
  0xaa   :  { %v82_v34 = vpop.xlane.xlu0 %81  ;;  %v94_v36 = vmul.f32 0.00390625, %v88_v33 }
  0xab   :  { %v92_v38 = vmul.f32 0.00390625, %v82_v34 }
  0xac   :  { %v233_v43 = vrot.slane %v94_v36, %v124_v35 }
  0xad   :  { %v91_v39 = vpop.xlane.xlu1 %90  ;;  %v224_v45 = vrot.slane %v92_v38, %v124_v35 }
  0xae   :  { %v95_v40 = vmul.f32 0.00390625, %v91_v39  ;;  %v85_v41 = vpop.xlane.xlu0 %84 }
  0xaf   :  { %v93_v42 = vmul.f32 0.00390625, %v85_v41 }
  0xb0   :  { %v237_v44 = vrot.slane %v95_v40, %v129_v37 }
  0xb1   :  { %v228_v46 = vrot.slane %v93_v42, %v129_v37  ;;  %v101_v47 = vpop.xlane.xlu1 %100 }
  0xb2   :  { %v98_v48 = vpop.xlane.xlu0 %97  ;;  %v238_v49 = vsel %vm131_vm1, %v237_v44, %v233_v43  ;;  %v109_v50 = vmul.f32 0.00390625, %v101_v47 }
  0xb3   :  { %v108_v51 = vmul.f32 0.00390625, %v98_v48  ;;  %v229_v52 = vsel %vm131_vm1, %v228_v46, %v224_v45 }
  0xb4   :  { %v239_v53 = vsel %vm142_vm2, %v238_v49, %v229_v52  ;;  %v130_v57 = vrot.slane %v109_v50, %v129_v37 }
  0xb5   :  { %655 = vmatmul.mubr.msk.f32.vlgmr.msra.gmra.mxu1 %vm144_vm3, %v239_v53  ;;  %v107_v54 = vpop.xlane.xlu1 %106  ;;  %v125_v58 = vrot.slane %v108_v51, %v124_v35  ;;  %v516_v51 = vsub.s32 0, %v916_v31 }
  0xb6   :  { %v111_v55 = vmul.f32 0.00390625, %v107_v54  ;;  %v104_v56 = vpop.xlane.xlu0 %103  ;;  %664 = vmatprep.mubr.msk.f32.mxu1 %vm784_vm0, %v783_v24  ;;  %663 = vmatpush3.msk.msra.mxu1 %vm333_vm4, %v420_v10 }
  0xb7   :  { %v110_v59 = vmul.f32 0.00390625, %v104_v56  ;;  %v132_v62 = vsel %vm131_vm1, %v130_v57, %v125_v58 }
  0xb8   :  { %v140_v60 = vrot.slane %v111_v55, %v129_v37 }
  0xb9   :  { %v136_v61 = vrot.slane %v110_v59, %v124_v35  ;;  %v527_v59 = vsub.s32 1, %v916_v31 }
  0xbb   :  { %v141_v63 = vsel %vm131_vm1, %v140_v60, %v136_v61 }
  0xbc   :  { %v143_v3 = vsel %vm142_vm2, %v141_v63, %v132_v62 }
  0xbd   :  { %648 = vmatmul.mubr.msk.f32.vlgmr.msra.gmra.mxu0 %vm144_vm3, %v143_v3 }
  0xbe   :  { %659 = vmatprep.mubr.msk.f32.mxu0 %vm784_vm0, %v783_v24  ;;  %658 = vmatpush3.msk.msra.mxu0 %vm333_vm4, %v321_v7 }
 0x175   :  { %v308_v11 = vpop.f32.mrf.mxu1 }
 0x177   :  { %v656_v16 = vpop.f32.mrf.mxu1 }
 0x17d   :  { %v213_v17 = vpop.f32.mrf.mxu0 }
 0x17e   :  { %v309_v23 = vadd.f32 %v308_v11, %v213_v17 }
 0x17f   :  { %v649_v24 = vpop.f32.mrf.mxu0 }
 0x180   :  { %v319_v25 = vadd.f32 %v626_v22, %v309_v23 }
 0x182   :  { %v320_v26 = vmax.f32 %v319_v25, 0.0 }
 0x184   :  { %660 = vmatmul.mubr.msk.f32.vlgmr.msra.gmra.mxu0 %vm329_vm5, %v320_v26  ;;  %665 = vmatmul.mubr.msk.f32.vlgmr.msra.gmra.mxu1 %vm329_vm5, %v320_v26 }
 0x244   :  { %v403_v29 = vpop.f32.mrf.mxu0  ;;  %v497_v30 = vpop.f32.mrf.mxu1 }
 0x245   :  { %v404_v32 = vadd.f32 %v627_v27, %v403_v29  ;;  %v498_v33 = vadd.f32 %v630_v28, %v497_v30 }
 0x246   :  { %v661_v34 = vpop.f32.mrf.mxu0  ;;  %v666_v35 = vpop.f32.mrf.mxu1 }
 0x247   :  { %v407_v36 = vsub.f32 0.0, %v404_v32  ;;  %v413_v37 = vmul.f32 1.442695, %v404_v32  ;;  %v501_v38 = vsub.f32 0.0, %v498_v33  ;;  %v507_v39 = vmul.f32 1.442695, %v498_v33 }
 0x248   :  { %vm418_vm6 = vcmp.ge.f32.partialorder %v404_v32, 0.0  ;;  %vm512_vm7 = vcmp.ge.f32.partialorder %v498_v33, 0.0 }
 0x249   :  { %v408_v40 = vmul.f32 1.442695, %v407_v36  ;;  %675 = vpow2.f32 %v413_v37  ;;  %v502_v41 = vmul.f32 1.442695, %v501_v38 }
 0x24a   :  { %677 = vpow2.f32 %v507_v39 }
 0x24b   :  { %679 = vpow2.f32 %v408_v40 }
 0x24c   :  { %681 = vpow2.f32 %v502_v41 }
 0x256   :  { %v676_v42 = vpop.eup %675 }
 0x257   :  { %v678_v43 = vpop.eup %677  ;;  %v415_v44 = vadd.f32 1.0, %v676_v42 }
 0x258   :  { %v680_v45 = vpop.eup %679  ;;  %v509_v46 = vadd.f32 1.0, %v678_v43 }
 0x259   :  { %v682_v47 = vpop.eup %681  ;;  %v410_v48 = vadd.f32 1.0, %v680_v45  ;;  %683 = vrcp.f32 %v415_v44 }
 0x25a   :  { %v504_v49 = vadd.f32 1.0, %v682_v47  ;;  %685 = vrcp.f32 %v509_v46 }
 0x25b   :  { %687 = vrcp.f32 %v410_v48 }
 0x25c   :  { %689 = vrcp.f32 %v504_v49 }
 0x266   :  { %v684_v50 = vpop.eup %683 }
 0x267   :  { %v686_v52 = vpop.eup %685  ;;  %v417_v53 = vmul.f32 %v684_v50, %v676_v42 }
 0x268   :  { %v688_v54 = vpop.eup %687  ;;  %v511_v55 = vmul.f32 %v686_v52, %v678_v43 }
 0x269   :  { %v690_v56 = vpop.eup %689  ;;  %v419_v57 = vsel %vm418_vm6, %v688_v54, %v417_v53 }
 0x26a   :  { %v517_v58 = vrot.slane %v419_v57, %v516_v51  ;;  %v513_v60 = vsel %vm512_vm7, %v690_v56, %v511_v55  ;;  %v528_v61 = vrot.slane %v419_v57, %v527_v59 }
 0x26b   :  { %v555_v62 = vrot.slane %v513_v60, %v516_v51  ;;  %v566_v63 = vrot.slane %v513_v60, %v527_v59 }
 0x26c   :  { %523 = vbcast.lane.b32.xlu1 %v517_v58, 264  ;;  %519 = vbcast.lane.b32.xlu0 %v517_v58, 256 }
 0x270   :  { %530 = vbcast.lane.b32.xlu1 %v528_v61, 256  ;;  %557 = vbcast.lane.b32.xlu0 %v555_v62, 256 }
 0x274   :  { %534 = vbcast.lane.b32.xlu1 %v528_v61, 264  ;;  %568 = vbcast.lane.b32.xlu0 %v566_v63, 256 }
 0x278   :  { %561 = vbcast.lane.b32.xlu1 %v555_v62, 264 }
 0x27c   :  { %572 = vbcast.lane.b32.xlu1 %v566_v63, 264 }
 0x2de   :  { %v524_v3 = vpop.permute.xlu1 %523  ;;  %v520_v7 = vpop.permute.xlu0 %519 }
 0x2df   :  { %v538_v10 = vmul.f32 %v524_v3, %v870_v8  ;;  %v539_v11 = vmul.f32 %v524_v3, %v872_v9  ;;  %v536_v31 = vmul.f32 %v520_v7, %v858_v2  ;;  %v537_v16 = vmul.f32 %v520_v7, %v862_v4 }
 0x2e1   :  { %546 = vst [vmem:[#allocation7 + $0x10] sm:$0xff] %v538_v10  ;;  %547 = vst [vmem:[#allocation7 + $0x18] sm:$0xff] %v539_v11 }
 0x2e2   :  { %544 = vst [vmem:[#allocation7] sm:$0xff] %v536_v31  ;;  %545 = vst [vmem:[#allocation7 + $0x8] sm:$0xff] %v537_v16  ;;  %v531_v17 = vpop.permute.xlu1 %530  ;;  %v558_v22 = vpop.permute.xlu0 %557 }
 0x2e3   :  { %v540_v23 = vmul.f32 %v531_v17, %v854_v0  ;;  %v541_v24 = vmul.f32 %v531_v17, %v856_v1  ;;  %v574_v25 = vmul.f32 %v558_v22, %v882_v14  ;;  %v575_v8 = vmul.f32 %v558_v22, %v884_v15 }
 0x2e5   :  { %548 = vst [vmem:[#allocation7 + $0x20] sm:$0xff] %v540_v23  ;;  %549 = vst [vmem:[#allocation7 + $0x28] sm:$0xff] %v541_v24 }
 0x2e6   :  { %582 = vst [vmem:[#allocation8] sm:$0xff] %v574_v25  ;;  %583 = vst [vmem:[#allocation8 + $0x8] sm:$0xff] %v575_v8  ;;  %v535_v2 = vpop.permute.xlu1 %534  ;;  %v569_v4 = vpop.permute.xlu0 %568 }
 0x2e7   :  { %v542_v9 = vmul.f32 %v535_v2, %v864_v5  ;;  %v543_v26 = vmul.f32 %v535_v2, %v866_v6  ;;  %v578_v0 = vmul.f32 %v569_v4, %v894_v20  ;;  %v579_v1 = vmul.f32 %v569_v4, %v896_v21 }
 0x2e9   :  { %550 = vst [vmem:[#allocation7 + $0x30] sm:$0xff] %v542_v9  ;;  %551 = vst [vmem:[#allocation7 + $0x38] sm:$0xff] %v543_v26 }
 0x2ea   :  { %586 = vst [vmem:[#allocation8 + $0x20] sm:$0xff] %v578_v0  ;;  %587 = vst [vmem:[#allocation8 + $0x28] sm:$0xff] %v579_v1  ;;  %v562_v14 = vpop.permute.xlu1 %561 }
 0x2eb   :  { %742 = shalt.err (!%p739_p0)
}
 0x2ec   :  { %601 = dma.vmem_to_hbm [thread:$0]  %s596_s6, 1024, %s984_s9, [#allocation4], %s780_s16, %s780_s16, %s781_s17   ;;  %v576_v5 = vmul.f32 %v562_v14, %v878_v12  ;;  %v577_v6 = vmul.f32 %v562_v14, %v880_v13 }
 0x2ed   :  { %s786_s21 = smov [#allocation8]  }
 0x2ee   :  { %s607_s22 = sshll.u32 %s786_s21, 4  ;;  %584 = vst [vmem:[#allocation8 + $0x10] sm:$0xff] %v576_v5  ;;  %585 = vst [vmem:[#allocation8 + $0x18] sm:$0xff] %v577_v6  ;;  %v573_v15 = vpop.permute.xlu1 %572  ;;  %s608_s22 = int_to_ptr.vmem [resolvable:$true] %s607_s22 }
 0x2ef   :  { %v580_v20 = vmul.f32 %v573_v15, %v890_v18  ;;  %v581_v21 = vmul.f32 %v573_v15, %v892_v19  ;;  %s751_s23 = scalar_lea.vmem %s608_s22, 1024  ;;  %p756_p2 = scmp.lt.s32.totalorder %s608_s22, %s608_s22 }
 0x2f0   :  { %p752_p1 = scmp.ne.s32.totalorder %s608_s22, %s751_s23  ;;  %p757_p3 = scmp.lt.s32.totalorder %s751_s23, %s751_s23 }
 0x2f1   :  { %588 = vst [vmem:[#allocation8 + $0x30] sm:$0xff] %v580_v20  ;;  %589 = vst [vmem:[#allocation8 + $0x38] sm:$0xff] %v581_v21 }
 0x2f2   :  { %p758_p4 = por %p757_p3, %p756_p2 }
 0x2f4   :  { %p759_p5 = pnand %p758_p4, %p752_p1 }
 0x2f6   :  { %762 = shalt.err (!%p759_p5)
}
 0x2f7   :  { %613 = dma.vmem_to_hbm [thread:$0]  %s608_s22, 1024, %s985_s10, [#allocation9], %s780_s16, %s780_s16, %s781_s17  }
 0x2f8   :  { %775 = dma.done.wait [#allocation4], 1024  }
 0x2f9   :  { %776 = vsyncadd [#allocation4], 4294966272 }
 0x2fa   :  { %777 = dma.done.wait [#allocation9], 1024  }
 0x2fb   :  { %778 = vsyncadd [#allocation9], 4294966272 }
 0x2fc   :  { %620 = vsyncpa [#allocation3], 1 }
 0x2fd   :  { %621 = vsyncpa [#allocation6], 1 }
 0x2fe   :  { %622 = vsyncpa [#allocation4], 1 }
 0x2ff   :  { %623 = vsyncpa [#allocation9], 1 }

</bundles_post_ra>
